<compile_context>
chip_gen: v7x
topology: tpu7x:2x2x1
jax: 0.10.0
libtpu: 0.0.40
codegen_flags: <defaults>
</compile_context>

<pallas_src>
import jax
import jax.numpy as jnp
from jax.experimental import pallas as pl
from jax.experimental.pallas import tpu as pltpu


# ----------------------------------------------------------------------------
# Kernel factory: fused 3-layer MLP over a tile of rows, `num_feats` feature
# streams for the first layer.
#   feat_k : [tile, F_k]  (any float dtype; cast to bf16 in VMEM)
#   w1_k   : [F_k, H1] bf16      b1 : [1, H1] f32
#   w2     : [H1, H1]  bf16      b2 : [1, H1] f32
#   w3t    : [C,  H1]  bf16      b3 : [C, 1 ] f32     (head, pre-transposed)
#   out    : [C, tile] f32                            (lane-dense store)
# Fused x+y path: H1 = 2*hidden, C = 2 (row0 = x_mean, row1 = x_mean+y_mean).
# x_only path:    H1 = hidden,   C = 1.
# ----------------------------------------------------------------------------
def _make_mlp_kernel(num_feats):
    def kernel(*refs):
        feat_refs = refs[:num_feats]
        w1_refs = refs[num_feats:2 * num_feats]
        b1_ref, w2_ref, b2_ref, w3t_ref, b3_ref, out_ref = refs[2 * num_feats:]

        # Layer 1: one dot per feature stream (no wrapper-side concat); bf16
        # cast happens in VMEM, accumulation is f32 on the MXU.
        h = b1_ref[...]                                       # [1, H1]
        for f_ref, w_ref in zip(feat_refs, w1_refs):
            h = h + jnp.dot(f_ref[...].astype(jnp.bfloat16), w_ref[...],
                            preferred_element_type=jnp.float32)
        h = jnp.maximum(h, 0.0).astype(jnp.bfloat16)          # ReLU

        # Layer 2.
        h = jnp.dot(h, w2_ref[...],
                    preferred_element_type=jnp.float32) + b2_ref[...]
        h = jnp.maximum(h, 0.0).astype(jnp.bfloat16)          # ReLU

        # Head, computed transposed ([C, tile]) so the output store is
        # lane-dense (last dim = row_tile, a multiple of 128) instead of a
        # 1-2 lane masked store.  Same pattern as q @ k.T.
        out_t = jax.lax.dot_general(
            w3t_ref[...], h, (((1,), (1,)), ((), ())),
            preferred_element_type=jnp.float32) + b3_ref[...]
        out_ref[...] = out_t

    return kernel


def _full_spec(shape):
    # Whole-array block, same block every grid step (stays resident in VMEM;
    # single-buffering via pl.Buffered(1) would be a minor further saving).
    ndim = len(shape)
    return pl.BlockSpec(shape, lambda i, _nd=ndim: (0,) * _nd)


def _choose_row_tile(n, *, max_tile=4096, min_steps=4):
    # - tiles are multiples of 128 rows,
    # - at least `min_steps` grid steps so v7x's 2 TensorCores both get work
    #   along the "parallel" axis and the pipeline has overlap,
    # - capped at `max_tile` rows (double-buffered tiles stay a few MiB, far
    #   under the scoped-VMEM limit on all generations),
    # - blocks split evenly so the last grid step is not mostly padding.
    blocks = pl.cdiv(n, 128)
    steps = max(min_steps, pl.cdiv(blocks * 128, max_tile))
    return min(max_tile, 128 * max(1, pl.cdiv(blocks, steps)))


def _run_mlp(feats, w1s, b1, w2, b2, w3t, b3t, *, row_tile=None):
    n = feats[0].shape[0]
    c_out = w3t.shape[0]
    if row_tile is None:
        row_tile = _choose_row_tile(n)
    grid = (pl.cdiv(n, row_tile),)

    feat_specs = [pl.BlockSpec((row_tile, f.shape[1]), lambda i: (i, 0))
                  for f in feats]
    resident = (*w1s, b1, w2, b2, w3t, b3t)
    weight_specs = [_full_spec(w.shape) for w in resident]

    out_t = pl.pallas_call(
        _make_mlp_kernel(len(feats)),
        grid=grid,
        in_specs=feat_specs + weight_specs,
        out_specs=pl.BlockSpec((c_out, row_tile), lambda i: (0, i)),
        out_shape=jax.ShapeDtypeStruct((c_out, n), jnp.float32),
        compiler_params=pltpu.CompilerParams(
            dimension_semantics=("parallel",)),
    )(*feats, *resident)
    return out_t                                              # [C, N]


# ----------------------------------------------------------------------------
# Parameter fusion: two 3-layer MLPs -> one fused MLP.  Layer 1 is kept as two
# separate operands (so the features need no concat); layer 2 is block
# diagonal; the head is a 2-row pre-transposed matrix whose row 0 = x_mean and
# row 1 = x_mean + y_mean.  Weights bf16, biases f32.
# ----------------------------------------------------------------------------
def _block_diag(a, b):
    ra, ca = a.shape
    rb, cb = b.shape
    return jnp.concatenate([
        jnp.concatenate([a, jnp.zeros((ra, cb), a.dtype)], axis=1),
        jnp.concatenate([jnp.zeros((rb, ca), b.dtype), b], axis=1),
    ], axis=0)


def fuse_reward_params(params):
    (xw1, xb1, xw2, xb2, xw3, xb3, yw1, yb1, yw2, yb2, yw3, yb3) = params
    bf = jnp.bfloat16
    # Layer 1, split per feature stream: h[:, :H] = x@xw1, h[:, H:] = y@yw1.
    w1x = jnp.concatenate([xw1, jnp.zeros_like(xw1)], axis=1).astype(bf)  # [x_in, 2H]
    w1y = jnp.concatenate([jnp.zeros_like(yw1), yw1], axis=1).astype(bf)  # [y_in, 2H]
    b1 = jnp.concatenate([xb1, yb1], axis=1)                              # [1, 2H]
    w2 = _block_diag(xw2, yw2).astype(bf)                                 # [2H, 2H]
    b2 = jnp.concatenate([xb2, yb2], axis=1)                              # [1, 2H]
    xw3t, yw3t = xw3.T, yw3.T                                             # [1, H]
    w3t = jnp.concatenate([
        jnp.concatenate([xw3t, jnp.zeros_like(yw3t)], axis=1),            # row 0: x only
        jnp.concatenate([xw3t, yw3t], axis=1),                            # row 1: x + y
    ], axis=0).astype(bf)                                                 # [2, 2H]
    b3t = jnp.concatenate([xb3, xb3 + yb3], axis=0)                       # [2, 1]
    return (w1x, w1y), b1, w2, b2, w3t, b3t


def x_only_reward_params(params):
    (xw1, xb1, xw2, xb2, xw3, xb3, *_rest) = params
    bf = jnp.bfloat16
    return ((xw1.astype(bf),), xb1, xw2.astype(bf), xb2,
            xw3.T.astype(bf), xb3)                                        # head [1,H], [1,1]


# ----------------------------------------------------------------------------
# Forward wrapper.  Returns (mean, x_mean, stddev_out); the module's
# Normal(mean, stddev_out) is fully characterised by that pair.
# ----------------------------------------------------------------------------
def reward_model_forward(x_feature, y_feature, params, *, stddev=1.0,
                         x_only=False, row_tile=None):
    lead_shape = x_feature.shape[:-1]
    x_in = x_feature.shape[-1]
    xf = x_feature.reshape(-1, x_in)

    if x_only:
        # Skip the y network entirely: no y_feature DMA, no y weights.
        w1s, b1, w2, b2, w3t, b3t = x_only_reward_params(params)
        feats = (xf,)
    else:
        assert y_feature.shape[:-1] == lead_shape, \
            "x_feature and y_feature must share identical leading dims"
        y_in = y_feature.shape[-1]
        yf = y_feature.reshape(-1, y_in)
        w1s, b1, w2, b2, w3t, b3t = fuse_reward_params(params)
        feats = (xf, yf)

    out_t = _run_mlp(feats, w1s, b1, w2, b2, w3t, b3t,
                     row_tile=row_tile)                  # [1, N] or [2, N]
    x_mean = out_t[0].reshape(lead_shape)                # squeeze(-1)
    mean = out_t[-1].reshape(lead_shape)                 # row 1 = x+y (fused)
    stddev_out = stddev / 2 if x_only else stddev
    # TODO(synk): torch.distributions.Normal has no Pallas equivalent; the
    # distribution is returned as its (mean, stddev) parameters.
    return mean, x_mean, stddev_out


# ----------------------------------------------------------------------------
# Deterministic parameter construction (PyTorch nn.Linear-style uniform init).
# Stored as [in, out] so the kernel does feat @ W + b.
# ----------------------------------------------------------------------------
def _linear_params(key, fan_in, fan_out):
    kw, kb = jax.random.split(key)
    bound = 1.0 / (fan_in ** 0.5)
    w = jax.random.uniform(kw, (fan_in, fan_out), jnp.float32, -bound, bound)
    b = jax.random.uniform(kb, (1, fan_out), jnp.float32, -bound, bound)
    return w, b


def make_reward_params(key, x_in, y_in, hidden):
    keys = jax.random.split(key, 6)
    xw1, xb1 = _linear_params(keys[0], x_in, hidden)
    xw2, xb2 = _linear_params(keys[1], hidden, hidden)
    xw3, xb3 = _linear_params(keys[2], hidden, 1)
    yw1, yb1 = _linear_params(keys[3], y_in, hidden)
    yw2, yb2 = _linear_params(keys[4], hidden, hidden)
    yw3, yb3 = _linear_params(keys[5], hidden, 1)
    return (xw1, xb1, xw2, xb2, xw3, xb3, yw1, yb1, yw2, yb2, yw3, yb3)


# ----------------------------------------------------------------------------
# Pure-JAX references (f32 and bf16-emulating) for verification.
# NOTE: kernel uses bf16 weights/activations with f32 accumulation; it matches
# the bf16-emulating reference tightly and the pure-f32 torch semantics only
# to bf16 rounding (~5e-2 here).
# ----------------------------------------------------------------------------
def _ref_mlp(f, w1, b1, w2, b2, w3, b3, *, emulate_bf16):
    hi = jax.lax.Precision.HIGHEST

    def r(a):
        return a.astype(jnp.bfloat16).astype(jnp.float32) if emulate_bf16 else a

    h = jnp.maximum(jnp.dot(r(f), r(w1), precision=hi) + b1, 0.0)
    h = jnp.maximum(jnp.dot(r(h), r(w2), precision=hi) + b2, 0.0)
    return (jnp.dot(r(h), r(w3), precision=hi) + b3)[..., 0]


def ref_forward(x_feature, y_feature, params, *, stddev=1.0, x_only=False,
                emulate_bf16=False):
    (xw1, xb1, xw2, xb2, xw3, xb3, yw1, yb1, yw2, yb2, yw3, yb3) = params
    x_mean = _ref_mlp(x_feature, xw1, xb1, xw2, xb2, xw3, xb3,
                      emulate_bf16=emulate_bf16)
    if x_only:
        return x_mean, x_mean, stddev / 2
    y_mean = _ref_mlp(y_feature, yw1, yb1, yw2, yb2, yw3, yb3,
                      emulate_bf16=emulate_bf16)
    return x_mean + y_mean, x_mean, stddev


if __name__ == "__main__":
    # Shapes consistent with the module's forward:
    #   x: belief=24, state=8  -> x_in = 32
    #   y: belief=16, state=16 -> y_in = 32
    #   hidden = 32
    x_in = 24 + 8
    y_in = 16 + 16
    hidden = 32
    key = jax.random.PRNGKey(0)
    k_xf, k_yf, k_p = jax.random.split(key, 3)
    params = make_reward_params(k_p, x_in, y_in, hidden)

    ok = True
    # Case 1: tiny leading dims (21 rows -> single partial tile).
    # Case 2: 385 rows -> 4 grid steps of 128 rows, last one partial.
    for (T, B) in ((3, 7), (5, 77)):
        kx, ky = jax.random.fold_in(k_xf, T), jax.random.fold_in(k_yf, T)
        x_feature = jax.random.normal(kx, (T, B, x_in), jnp.float32)
        y_feature = jax.random.normal(ky, (T, B, y_in), jnp.float32)

        # Full forward (x + y networks, fused kernel).
        mean, x_mean, sd = reward_model_forward(x_feature, y_feature, params,
                                                stddev=1.0, x_only=False)
        # x_only path (y network skipped entirely).
        mean_xo, x_mean_xo, sd_xo = reward_model_forward(
            x_feature, y_feature, params, stddev=1.0, x_only=True)
        jax.block_until_ready((mean, x_mean, mean_xo, x_mean_xo))

        ok &= mean.shape == (T, B) and x_mean.shape == (T, B)
        ok &= mean_xo.shape == (T, B) and x_mean_xo.shape == (T, B)
        ok &= (sd == 1.0) and (sd_xo == 0.5)

        # Tight check vs. a reference emulating bf16 inputs / f32 accumulation.
        r_mean, r_x_mean, _ = ref_forward(x_feature, y_feature, params,
                                          emulate_bf16=True)
        r_mean_xo, _, _ = ref_forward(x_feature, y_feature, params,
                                      x_only=True, emulate_bf16=True)
        ok &= bool(jnp.allclose(mean, r_mean, atol=1e-3, rtol=1e-3))
        ok &= bool(jnp.allclose(x_mean, r_x_mean, atol=1e-3, rtol=1e-3))
        ok &= bool(jnp.allclose(mean_xo, r_mean_xo, atol=1e-3, rtol=1e-3))
        ok &= bool(jnp.allclose(x_mean_xo, r_mean_xo, atol=1e-3, rtol=1e-3))

        # Loose sanity check against the pure-f32 reference (bf16 rounding).
        f_mean, f_x_mean, _ = ref_forward(x_feature, y_feature, params)
        ok &= bool(jnp.allclose(mean, f_mean, atol=5e-2, rtol=5e-2))
        ok &= bool(jnp.allclose(x_mean, f_x_mean, atol=5e-2, rtol=5e-2))

    assert ok, "reward model Pallas kernel mismatch vs reference"
    print("KERNEL_OK")
</pallas_src>

<mosaic_0001>
module attributes {stable_mosaic.version = 11 : i64} {
  func.func @kernel(%arg0: i32, %arg1: memref<128x32xf32, #tpu.memory_space<vmem>>, %arg2: memref<128x32xf32, #tpu.memory_space<vmem>>, %arg3: memref<32x64xbf16, #tpu.memory_space<vmem>>, %arg4: memref<32x64xbf16, #tpu.memory_space<vmem>>, %arg5: memref<1x64xf32, #tpu.memory_space<vmem>>, %arg6: memref<64x64xbf16, #tpu.memory_space<vmem>>, %arg7: memref<1x64xf32, #tpu.memory_space<vmem>>, %arg8: memref<2x64xbf16, #tpu.memory_space<vmem>>, %arg9: memref<2x1xf32, #tpu.memory_space<vmem>>, %arg10: memref<2x128xf32, #tpu.memory_space<vmem>>) attributes {dimension_semantics = [#tpu.dimension_semantics<parallel>], iteration_bounds = array<i64: 1>, scalar_prefetch = 0 : i64, scratch_operands = 0 : i64, tpu.core_type = #tpu.core_type<tc>, window_params = [{transform_indices = @transform_0, window_bounds = array<i64: 128, 32>}, {transform_indices = @transform_1, window_bounds = array<i64: 128, 32>}, {pipeline_mode = #tpu.pipeline_mode<synchronous>, transform_indices = @transform_2, window_bounds = array<i64: 32, 64>}, {pipeline_mode = #tpu.pipeline_mode<synchronous>, transform_indices = @transform_3, window_bounds = array<i64: 32, 64>}, {pipeline_mode = #tpu.pipeline_mode<synchronous>, transform_indices = @transform_4, window_bounds = array<i64: 1, 64>}, {pipeline_mode = #tpu.pipeline_mode<synchronous>, transform_indices = @transform_5, window_bounds = array<i64: 64, 64>}, {pipeline_mode = #tpu.pipeline_mode<synchronous>, transform_indices = @transform_6, window_bounds = array<i64: 1, 64>}, {pipeline_mode = #tpu.pipeline_mode<synchronous>, transform_indices = @transform_7, window_bounds = array<i64: 2, 64>}, {pipeline_mode = #tpu.pipeline_mode<synchronous>, transform_indices = @transform_8, window_bounds = array<i64: 2, 1>}, {transform_indices = @transform_9, window_bounds = array<i64: 2, 128>}]} {
    %c0 = arith.constant 0 : index
    %c0_0 = arith.constant 0 : index
    %0 = vector.load %arg5[%c0, %c0_0] : memref<1x64xf32, #tpu.memory_space<vmem>>, vector<1x64xf32>
    %c0_1 = arith.constant 0 : index
    %c0_2 = arith.constant 0 : index
    %1 = vector.load %arg1[%c0_1, %c0_2] : memref<128x32xf32, #tpu.memory_space<vmem>>, vector<128x32xf32>
    %2 = arith.truncf %1 : vector<128x32xf32> to vector<128x32xbf16>
    %c0_3 = arith.constant 0 : index
    %c0_4 = arith.constant 0 : index
    %3 = vector.load %arg3[%c0_3, %c0_4] : memref<32x64xbf16, #tpu.memory_space<vmem>>, vector<32x64xbf16>
    %cst = arith.constant dense<0.000000e+00> : vector<128x64xf32>
    %4 = tpu.matmul %2, %3, %cst {dimension_numbers = #tpu.dot_dimension_numbers<[1], [0], [0], [1], [0, 0, 1, 1], [], []>} : vector<128x32xbf16>, vector<32x64xbf16>, vector<128x64xf32> -> vector<128x64xf32>
    %5 = vector.broadcast %0 : vector<1x64xf32> to vector<128x64xf32>
    %6 = arith.addf %5, %4 : vector<128x64xf32>
    %c0_5 = arith.constant 0 : index
    %c0_6 = arith.constant 0 : index
    %7 = vector.load %arg2[%c0_5, %c0_6] : memref<128x32xf32, #tpu.memory_space<vmem>>, vector<128x32xf32>
    %8 = arith.truncf %7 : vector<128x32xf32> to vector<128x32xbf16>
    %c0_7 = arith.constant 0 : index
    %c0_8 = arith.constant 0 : index
    %9 = vector.load %arg4[%c0_7, %c0_8] : memref<32x64xbf16, #tpu.memory_space<vmem>>, vector<32x64xbf16>
    %cst_9 = arith.constant dense<0.000000e+00> : vector<128x64xf32>
    %10 = tpu.matmul %8, %9, %cst_9 {dimension_numbers = #tpu.dot_dimension_numbers<[1], [0], [0], [1], [0, 0, 1, 1], [], []>} : vector<128x32xbf16>, vector<32x64xbf16>, vector<128x64xf32> -> vector<128x64xf32>
    %11 = arith.addf %6, %10 : vector<128x64xf32>
    %cst_10 = arith.constant 0.000000e+00 : f32
    %12 = vector.broadcast %cst_10 : f32 to vector<128x64xf32>
    %13 = arith.maximumf %11, %12 : vector<128x64xf32>
    %14 = arith.truncf %13 : vector<128x64xf32> to vector<128x64xbf16>
    %c0_11 = arith.constant 0 : index
    %c0_12 = arith.constant 0 : index
    %15 = vector.load %arg6[%c0_11, %c0_12] : memref<64x64xbf16, #tpu.memory_space<vmem>>, vector<64x64xbf16>
    %cst_13 = arith.constant dense<0.000000e+00> : vector<128x64xf32>
    %16 = tpu.matmul %14, %15, %cst_13 {dimension_numbers = #tpu.dot_dimension_numbers<[1], [0], [0], [1], [0, 0, 1, 1], [], []>} : vector<128x64xbf16>, vector<64x64xbf16>, vector<128x64xf32> -> vector<128x64xf32>
    %c0_14 = arith.constant 0 : index
    %c0_15 = arith.constant 0 : index
    %17 = vector.load %arg7[%c0_14, %c0_15] : memref<1x64xf32, #tpu.memory_space<vmem>>, vector<1x64xf32>
    %18 = vector.broadcast %17 : vector<1x64xf32> to vector<128x64xf32>
    %19 = arith.addf %16, %18 : vector<128x64xf32>
    %cst_16 = arith.constant 0.000000e+00 : f32
    %20 = vector.broadcast %cst_16 : f32 to vector<128x64xf32>
    %21 = arith.maximumf %19, %20 : vector<128x64xf32>
    %22 = arith.truncf %21 : vector<128x64xf32> to vector<128x64xbf16>
    %c0_17 = arith.constant 0 : index
    %c0_18 = arith.constant 0 : index
    %23 = vector.load %arg8[%c0_17, %c0_18] : memref<2x64xbf16, #tpu.memory_space<vmem>>, vector<2x64xbf16>
    %cst_19 = arith.constant dense<0.000000e+00> : vector<2x128xf32>
    %24 = tpu.matmul %23, %22, %cst_19 {dimension_numbers = #tpu.dot_dimension_numbers<[1], [1], [0], [0], [0, 0, 1, 0], [], []>} : vector<2x64xbf16>, vector<128x64xbf16>, vector<2x128xf32> -> vector<2x128xf32>
    %c0_20 = arith.constant 0 : index
    %c0_21 = arith.constant 0 : index
    %25 = vector.load %arg9[%c0_20, %c0_21] : memref<2x1xf32, #tpu.memory_space<vmem>>, vector<2x1xf32>
    %26 = vector.broadcast %25 : vector<2x1xf32> to vector<2x128xf32>
    %27 = arith.addf %24, %26 : vector<2x128xf32>
    %c0_22 = arith.constant 0 : index
    %c0_23 = arith.constant 0 : index
    %28 = vector.load %arg10[%c0_22, %c0_23] : memref<2x128xf32, #tpu.memory_space<vmem>>, vector<2x128xf32>
    tpu.vector_store %arg10[%c0_22, %c0_23], %27 {strides = array<i32>} : memref<2x128xf32, #tpu.memory_space<vmem>>, vector<2x128xf32>,
    return
  }
  func.func @transform_0(%arg0: i32) -> (i32, i32) {
    %c0_i32 = arith.constant 0 : i32
    %c0_i32_0 = arith.constant 0 : i32
    return %arg0, %c0_i32 : i32, i32
  }
  func.func @transform_1(%arg0: i32) -> (i32, i32) {
    %c0_i32 = arith.constant 0 : i32
    %c0_i32_0 = arith.constant 0 : i32
    return %arg0, %c0_i32 : i32, i32
  }
  func.func @transform_2(%arg0: i32) -> (i32, i32) {
    %c0_i32 = arith.constant 0 : i32
    %c0_i32_0 = arith.constant 0 : i32
    %c0_i32_1 = arith.constant 0 : i32
    return %c0_i32, %c0_i32_0 : i32, i32
  }
  func.func @transform_3(%arg0: i32) -> (i32, i32) {
    %c0_i32 = arith.constant 0 : i32
    %c0_i32_0 = arith.constant 0 : i32
    %c0_i32_1 = arith.constant 0 : i32
    return %c0_i32, %c0_i32_0 : i32, i32
  }
  func.func @transform_4(%arg0: i32) -> (i32, i32) {
    %c0_i32 = arith.constant 0 : i32
    %c0_i32_0 = arith.constant 0 : i32
    %c0_i32_1 = arith.constant 0 : i32
    return %c0_i32, %c0_i32_0 : i32, i32
  }
  func.func @transform_5(%arg0: i32) -> (i32, i32) {
    %c0_i32 = arith.constant 0 : i32
    %c0_i32_0 = arith.constant 0 : i32
    %c0_i32_1 = arith.constant 0 : i32
    return %c0_i32, %c0_i32_0 : i32, i32
  }
  func.func @transform_6(%arg0: i32) -> (i32, i32) {
    %c0_i32 = arith.constant 0 : i32
    %c0_i32_0 = arith.constant 0 : i32
    %c0_i32_1 = arith.constant 0 : i32
    return %c0_i32, %c0_i32_0 : i32, i32
  }
  func.func @transform_7(%arg0: i32) -> (i32, i32) {
    %c0_i32 = arith.constant 0 : i32
    %c0_i32_0 = arith.constant 0 : i32
    %c0_i32_1 = arith.constant 0 : i32
    return %c0_i32, %c0_i32_0 : i32, i32
  }
  func.func @transform_8(%arg0: i32) -> (i32, i32) {
    %c0_i32 = arith.constant 0 : i32
    %c0_i32_0 = arith.constant 0 : i32
    %c0_i32_1 = arith.constant 0 : i32
    return %c0_i32, %c0_i32_0 : i32, i32
  }
  func.func @transform_9(%arg0: i32) -> (i32, i32) {
    %c0_i32 = arith.constant 0 : i32
    %c0_i32_0 = arith.constant 0 : i32
    return %c0_i32, %arg0 : i32, i32
  }
}

</mosaic_0001>

<bundles_post_ra>
// kernel: tpu_custom_call.1
= control target key start
LH: loop header
LB: loop body
LE: loop exit
PB: predicated region body
PF: predicated region fallthrough
CT: control target
= control target key end

     0   :  { %14 = vsyncpa [#allocation3], 0  ;;  %s1317_s0 = inlined_call_operand.hbm [shape: f32[21,32], index: 0, kind: input, shape index: {}]   ;;  %s1318_s1 = inlined_call_operand.hbm [shape: f32[21,32], index: 1, kind: input, shape index: {}]   ;;  %s1319_s2 = inlined_call_operand.hbm [shape: bf16[32,64], index: 2, kind: input, shape index: {}]   ;;  %s1320_s3 = inlined_call_operand.hbm [shape: bf16[32,64], index: 3, kind: input, shape index: {}]   ;;  %s1321_s4 = inlined_call_operand.vmem [shape: f32[1,64], index: 4, kind: input, shape index: {}]   ;;  %s1322_s5 = inlined_call_operand.hbm [shape: bf16[64,64], index: 5, kind: input, shape index: {}]   ;;  %s1323_s6 = inlined_call_operand.vmem [shape: f32[1,64], index: 6, kind: input, shape index: {}]   ;;  %s1324_s7 = inlined_call_operand.vmem [shape: bf16[2,64], index: 7, kind: input, shape index: {}]   ;;  %s1325_s8 = inlined_call_operand.vmem [shape: f32[2,1], index: 8, kind: input, shape index: {}]   ;;  %s1326_s9 = inlined_call_operand.hbm [shape: f32[2,21], index: 9, kind: output, shape index: {}]  }
   0x1   :  { %15 = vsyncpa [#allocation6], 0 }
   0x2   :  { %16 = vsyncpa [#allocation9], 0 }
   0x3   :  { %17 = vsyncpa [#allocation4], 0 }
   0x4   :  { %22 = vsyncadd [#allocation3], 1664  ;;  %s1119_s30 = smov [#allocation2]   ;;  %s979_s13 = scalar_lea.hbm %s1317_s0, 384 }
   0x5   :  { %s23_s10 = sshll.u32 %s1119_s30, 4  ;;  %p980_p0 = scmp.ne.s32.totalorder %s1317_s0, %s979_s13  ;;  %s24_s10 = int_to_ptr.vmem [resolvable:$true] %s23_s10 }
   0x6   :  { %p983_p1 = scmp.lt.u32.totalorder %s979_s13, %s1317_s0 }
   0x8   :  { %p985_p2 = pnand %p983_p1, %p980_p0 }
   0xa   :  { %988 = shalt.err (!%p985_p2)
}
   0xb   :  { %s989_s18 = scalar_lea.vmem %s24_s10, 384  ;;  %s993_s19 = scalar_lea.vmem %s24_s10, 2048 }
   0xc   :  { %p990_p3 = scmp.ne.s32.totalorder %s24_s10, %s989_s18  ;;  %p994_p4 = scmp.lt.s32.totalorder %s24_s10, %s24_s10 }
   0xd   :  { %p995_p5 = scmp.lt.s32.totalorder %s993_s19, %s989_s18 }
   0xf   :  { %p996_p6 = por %p995_p5, %p994_p4 }
  0x11   :  { %p997_p7 = pnand %p996_p6, %p990_p3 }
  0x13   :  { %1000 = shalt.err (!%p997_p7)
}
  0x14   :  { %s1120_s20 = smov 128   ;;  %s1121_s21 = smov 8  }
  0x15   :  { %29 = dma.hbm_to_vmem [thread:$0]  %s1317_s0, 384, %s24_s10, [#allocation3], %s1120_s20, %s1120_s20, %s1121_s21  }
  0x16   :  { %34 = vsyncadd [#allocation6], 1664  ;;  %s1122_s24 = smov [#allocation5]   ;;  %s1001_s28 = scalar_lea.hbm %s1318_s1, 384 }
  0x17   :  { %s35_s25 = sshll.u32 %s1122_s24, 4  ;;  %p1002_p8 = scmp.ne.s32.totalorder %s1318_s1, %s1001_s28  ;;  %s36_s25 = int_to_ptr.vmem [resolvable:$true] %s35_s25 }
  0x18   :  { %p1005_p9 = scmp.lt.u32.totalorder %s1001_s28, %s1318_s1 }
  0x1a   :  { %p1007_p10 = pnand %p1005_p9, %p1002_p8 }
  0x1c   :  { %1010 = shalt.err (!%p1007_p10)
}
  0x1d   :  { %s1011_s13 = scalar_lea.vmem %s36_s25, 384  ;;  %s1015_s0 = scalar_lea.vmem %s36_s25, 2048 }
  0x1e   :  { %p1012_p11 = scmp.ne.s32.totalorder %s36_s25, %s1011_s13  ;;  %p1016_p12 = scmp.lt.s32.totalorder %s36_s25, %s36_s25 }
  0x1f   :  { %p1017_p13 = scmp.lt.s32.totalorder %s1015_s0, %s1011_s13 }
  0x21   :  { %p1018_p0 = por %p1017_p13, %p1016_p12 }
  0x23   :  { %p1019_p1 = pnand %p1018_p0, %p1012_p11 }
  0x25   :  { %1022 = shalt.err (!%p1019_p1)
}
  0x26   :  { %41 = dma.hbm_to_vmem [thread:$0]  %s1318_s1, 384, %s36_s25, [#allocation6], %s1120_s20, %s1120_s20, %s1121_s21  }
  0x27   :  { %s1123_s15 = smov [#allocation8]   ;;  %s1124_s17 = smov [#allocation7]  }
  0x28   :  { %s59_s16 = sshll.u32 %s1123_s15, 4  ;;  %s47_s18 = sshll.u32 %s1124_s17, 4  ;;  %s60_s16 = int_to_ptr.vmem [resolvable:$true] %s59_s16  ;;  %s48_s18 = int_to_ptr.vmem [resolvable:$true] %s47_s18 }
  0x29   :  { %s1023_s23 = scalar_lea.hbm %s1320_s3, 256 }
  0x2a   :  { %p1024_p2 = scmp.ne.s32.totalorder %s1320_s3, %s1023_s23  ;;  %p1027_p3 = scmp.lt.u32.totalorder %s1023_s23, %s1320_s3 }
  0x2c   :  { %p1029_p4 = pnand %p1027_p3, %p1024_p2 }
  0x2e   :  { %1032 = shalt.err (!%p1029_p4)
}
  0x2f   :  { %s1033_s1 = scalar_lea.vmem %s60_s16, 256  ;;  %p1038_p6 = scmp.lt.s32.totalorder %s60_s16, %s60_s16 }
  0x30   :  { %p1034_p5 = scmp.ne.s32.totalorder %s60_s16, %s1033_s1  ;;  %p1039_p7 = scmp.lt.s32.totalorder %s1033_s1, %s1033_s1 }
  0x32   :  { %p1040_p8 = por %p1039_p7, %p1038_p6 }
  0x34   :  { %p1041_p9 = pnand %p1040_p8, %p1034_p5 }
  0x36   :  { %1044 = shalt.err (!%p1041_p9)
}
  0x37   :  { %s1125_s20 = smov 64   ;;  %s1126_s21 = smov 4  }
  0x38   :  { %65 = dma.hbm_to_vmem [thread:$0]  %s1320_s3, 256, %s60_s16, [#allocation9], %s1125_s20, %s1125_s20, %s1126_s21  }
  0x39   :  { %s1045_s12 = scalar_lea.hbm %s1319_s2, 256 }
  0x3a   :  { %p1046_p10 = scmp.ne.s32.totalorder %s1319_s2, %s1045_s12  ;;  %p1049_p11 = scmp.lt.u32.totalorder %s1045_s12, %s1319_s2 }
  0x3c   :  { %p1051_p12 = pnand %p1049_p11, %p1046_p10 }
  0x3e   :  { %1054 = shalt.err (!%p1051_p12)
}
  0x3f   :  { %s1055_s15 = scalar_lea.vmem %s48_s18, 256  ;;  %p1060_p0 = scmp.lt.s32.totalorder %s48_s18, %s48_s18 }
  0x40   :  { %p1056_p13 = scmp.ne.s32.totalorder %s48_s18, %s1055_s15  ;;  %p1061_p1 = scmp.lt.s32.totalorder %s1055_s15, %s1055_s15 }
  0x42   :  { %p1062_p2 = por %p1061_p1, %p1060_p0 }
  0x44   :  { %p1063_p3 = pnand %p1062_p2, %p1056_p13 }
  0x46   :  { %1066 = shalt.err (!%p1063_p3)
}
  0x47   :  { %53 = dma.hbm_to_vmem [thread:$0]  %s1319_s2, 256, %s48_s18, [#allocation6], %s1125_s20, %s1125_s20, %s1126_s21  }
  0x48   :  { %s1127_s17 = smov [#allocation10]   ;;  %s1067_s24 = scalar_lea.hbm %s1322_s5, 512 }
  0x49   :  { %s73_s19 = sshll.u32 %s1127_s17, 4  ;;  %p1068_p4 = scmp.ne.s32.totalorder %s1322_s5, %s1067_s24  ;;  %s74_s19 = int_to_ptr.vmem [resolvable:$true] %s73_s19 }
  0x4a   :  { %p1071_p5 = scmp.lt.u32.totalorder %s1067_s24, %s1322_s5 }
  0x4c   :  { %p1073_p6 = pnand %p1071_p5, %p1068_p4 }
  0x4e   :  { %1076 = shalt.err (!%p1073_p6)
}
  0x4f   :  { %s1077_s25 = scalar_lea.vmem %s74_s19, 512  ;;  %p1082_p8 = scmp.lt.s32.totalorder %s74_s19, %s74_s19 }
  0x50   :  { %p1078_p7 = scmp.ne.s32.totalorder %s74_s19, %s1077_s25  ;;  %p1083_p9 = scmp.lt.s32.totalorder %s1077_s25, %s1077_s25 }
  0x52   :  { %p1084_p10 = por %p1083_p9, %p1082_p8 }
  0x54   :  { %p1085_p11 = pnand %p1084_p10, %p1078_p7 }
  0x56   :  { %1088 = shalt.err (!%p1085_p11)
}
  0x57   :  { %79 = dma.hbm_to_vmem [thread:$0]  %s1322_s5, 512, %s74_s19, [#allocation9], %s1125_s20, %s1125_s20, %s1126_s21  }
  0x58   :  { %1111 = dma.done.wait [#allocation3], 2048  }
  0x59   :  { %1112 = vsyncadd [#allocation3], 4294965248 }
  0x5a   :  { %1113 = dma.done.wait [#allocation6], 2304  }
  0x5b   :  { %1114 = vsyncadd [#allocation6], 4294964992 }
  0x5c   :  { %1115 = dma.done.wait [#allocation9], 768  }
  0x5d   :  { %1116 = vsyncadd [#allocation9], 4294966528  ;;  %v971_v0 = vld [vmem:[#allocation7] sm:$0xff]   ;;  %v972_v1 = vld [vmem:[#allocation7 + $0x8] sm:$0xff]   ;;  %vm143_vm0 = vcmask 261120   ;;  %vm527_vm1 = vcmask 523264  }
  0x5e   :  { %841 = vmatprep.subr.bf16.mxu0 %v971_v0  ;;  %v103_v2 = vld [vmem:[#allocation2] sm:$0xff]  ;;  %v104_v3 = vld [vmem:[#allocation2 + $0x8] sm:$0xff]  ;;  %v105_v4 = vld [vmem:[#allocation2 + $0x10] sm:$0xff]  ;;  %vm1129_vm2 = vmmov 0   ;;  %s1131_s11 = smov [#allocation11]  }
  0x5f   :  { %842 = vmatpush3.bf16.msra.mxu0 %v971_v0  ;;  %v119_v5 = vpack.c.bf16 %v104_v3, %v103_v2  ;;  %v106_v6 = vld [vmem:[#allocation2 + $0x18] sm:$0xff]  ;;  %v973_v7 = vld [vmem:[#allocation8] sm:$0xff]   ;;  %v107_v8 = vld [vmem:[#allocation2 + $0x20] sm:$0xff]  ;;  %s754_s12 = sshll.u32 %s1131_s11, 4  ;;  %s755_s12 = int_to_ptr.vmem [resolvable:$true] %s754_s12 }
  0x60   :  { %843 = vmatprep.subr.bf16.mxu0 %v972_v1  ;;  %v108_v9 = vld [vmem:[#allocation2 + $0x28] sm:$0xff]  ;;  %v120_v10 = vpack.c.bf16 %v106_v6, %v105_v4  ;;  %v974_v12 = vld [vmem:[#allocation8 + $0x8] sm:$0xff]   ;;  %v109_v13 = vld [vmem:[#allocation2 + $0x30] sm:$0xff]  ;;  %s1089_s13 = scalar_lea.vmem %s755_s12, 32  ;;  %p1094_p13 = scmp.lt.s32.totalorder %s755_s12, %s755_s12 }
  0x61   :  { %845 = vmatprep.mubr.msk.bf16.mxu0 %vm143_vm0, %v119_v5  ;;  %v121_v11 = vpack.c.bf16 %v108_v9, %v107_v8  ;;  %v110_v14 = vld [vmem:[#allocation2 + $0x38] sm:$0xff]  ;;  %v111_v15 = vld [vmem:[#allocation2 + $0x40] sm:$0xff]  ;;  %v112_v16 = vld [vmem:[#allocation2 + $0x48] sm:$0xff]  ;;  %p1090_p12 = scmp.ne.s32.totalorder %s755_s12, %s1089_s13  ;;  %p1095_p0 = scmp.lt.s32.totalorder %s1089_s13, %s1089_s13 }
  0x62   :  { %v122_v17 = vpack.c.bf16 %v110_v14, %v109_v13  ;;  %v123_v18 = vpack.c.bf16 %v112_v16, %v111_v15  ;;  %v975_v19 = vld [vmem:[#allocation10] sm:$0xff]   ;;  %v976_v20 = vld [vmem:[#allocation10 + $0x8] sm:$0xff]   ;;  %v113_v21 = vld [vmem:[#allocation2 + $0x50] sm:$0xff] }
  0x63   :  { %844 = vmatpush3.bf16.msra.mxu0 %v972_v1  ;;  %881 = vmatprep.subr.bf16.mxu1 %v975_v19  ;;  %v114_v22 = vld [vmem:[#allocation2 + $0x58] sm:$0xff]  ;;  %v115_v23 = vld [vmem:[#allocation2 + $0x60] sm:$0xff]  ;;  %v116_v24 = vld [vmem:[#allocation2 + $0x68] sm:$0xff]  ;;  %p1096_p1 = por %p1095_p0, %p1094_p13 }
  0x64   :  { %861 = vmatprep.subr.bf16.mxu0 %v973_v7  ;;  %882 = vmatpush3.bf16.msra.mxu1 %v975_v19  ;;  %v124_v25 = vpack.c.bf16 %v114_v22, %v113_v21  ;;  %v125_v26 = vpack.c.bf16 %v116_v24, %v115_v23  ;;  %v117_v27 = vld [vmem:[#allocation2 + $0x70] sm:$0xff]  ;;  %v118_v28 = vld [vmem:[#allocation2 + $0x78] sm:$0xff]  ;;  %v287_v29 = vld [vmem:[#allocation5] sm:$0xff] }
  0x65   :  { %883 = vmatprep.subr.bf16.mxu1 %v976_v20  ;;  %v288_v30 = vld [vmem:[#allocation5 + $0x8] sm:$0xff]  ;;  %v126_v31 = vpack.c.bf16 %v118_v28, %v117_v27  ;;  %v289_v33 = vld [vmem:[#allocation5 + $0x10] sm:$0xff]  ;;  %v290_v34 = vld [vmem:[#allocation5 + $0x18] sm:$0xff]  ;;  %p1097_p2 = pnand %p1096_p1, %p1090_p12 }
  0x66   :  { %846 = vmatmul.mubr.msk.bf16.vlgmr.msra.gmra.mrb[0].mxu0 %vm143_vm0, %v120_v10  ;;  %v303_v32 = vpack.c.bf16 %v288_v30, %v287_v29  ;;  %v291_v35 = vld [vmem:[#allocation5 + $0x20] sm:$0xff]  ;;  %v292_v36 = vld [vmem:[#allocation5 + $0x28] sm:$0xff]  ;;  %v304_v37 = vpack.c.bf16 %v290_v34, %v289_v33  ;;  %v293_v39 = vld [vmem:[#allocation5 + $0x30] sm:$0xff] }
  0x67   :  { %862 = vmatpush3.bf16.msra.mxu0 %v973_v7  ;;  %849 = vmatprep.mubr.msk.bf16.mxu0 %vm143_vm0, %v121_v11  ;;  %v305_v38 = vpack.c.bf16 %v292_v36, %v291_v35  ;;  %v294_v40 = vld [vmem:[#allocation5 + $0x38] sm:$0xff]  ;;  %v295_v41 = vld [vmem:[#allocation5 + $0x40] sm:$0xff]  ;;  %v296_v42 = vld [vmem:[#allocation5 + $0x48] sm:$0xff] }
  0x68   :  { %863 = vmatprep.subr.bf16.mxu0 %v974_v12  ;;  %884 = vmatpush3.bf16.msra.mxu1 %v976_v20  ;;  %v306_v43 = vpack.c.bf16 %v294_v40, %v293_v39  ;;  %v307_v44 = vpack.c.bf16 %v296_v42, %v295_v41  ;;  %v297_v45 = vld [vmem:[#allocation5 + $0x50] sm:$0xff]  ;;  %v298_v46 = vld [vmem:[#allocation5 + $0x58] sm:$0xff]  ;;  %v299_v47 = vld [vmem:[#allocation5 + $0x60] sm:$0xff] }
  0x69   :  { %v300_v48 = vld [vmem:[#allocation5 + $0x68] sm:$0xff]  ;;  %v308_v49 = vpack.c.bf16 %v298_v46, %v297_v45  ;;  %v301_v51 = vld [vmem:[#allocation5 + $0x70] sm:$0xff]  ;;  %v302_v52 = vld [vmem:[#allocation5 + $0x78] sm:$0xff] }
  0x6a   :  { %v309_v50 = vpack.c.bf16 %v300_v48, %v299_v47  ;;  %v310_v53 = vpack.c.bf16 %v302_v52, %v301_v51  ;;  %v977_v54 = vld [vmem:[#allocation10 + $0x10] sm:$0xff]   ;;  %v978_v55 = vld [vmem:[#allocation10 + $0x18] sm:$0xff]   ;;  %v775_v56 = vld [vmem:[%s1321_s4] ss:$0 sm:$0xff]  ;;  %v1130_v51 = vmov 0  }
  0x6b   :  { %864 = vmatpush3.bf16.msra.mxu0 %v974_v12  ;;  %885 = vmatprep.subr.bf16.mxu1 %v977_v54  ;;  %v786_v52 = vld [vmem:[%s1323_s6] ss:$0 sm:$0xff] }
  0x6c   :  { %886 = vmatpush3.bf16.msra.mxu1 %v977_v54  ;;  %970 = vset.pattern.permute.xlu0 %v1130_v51 }
  0x6d   :  { %887 = vmatprep.subr.bf16.mxu1 %v978_v55 }
  0x6e   :  { %850 = vmatmul.mubr.msk.bf16.gmra.mrb[4].mxu0 %vm143_vm0, %v122_v17 }
  0x6f   :  { %853 = vmatprep.mubr.msk.bf16.mxu0 %vm143_vm0, %v123_v18 }
  0x70   :  { %888 = vmatpush3.bf16.msra.mxu1 %v978_v55 }
  0x76   :  { %854 = vmatmul.mubr.msk.bf16.gmra.mrb[8].mxu0 %vm143_vm0, %v124_v25 }
  0x77   :  { %857 = vmatprep.mubr.msk.bf16.mxu0 %vm143_vm0, %v125_v26 }
  0x7e   :  { %858 = vmatmul.mubr.msk.bf16.gmra.mrb[12].mxu0 %vm143_vm0, %v126_v31 }
  0x7f   :  { %865 = vmatprep.mubr.msk.bf16.mxu0 %vm143_vm0, %v303_v32 }
  0x86   :  { %866 = vmatmul.mubr.msk.bf16.vlgmr.msra.gmra.mrb[0].mxu0 %vm143_vm0, %v304_v37 }
  0x87   :  { %869 = vmatprep.mubr.msk.bf16.mxu0 %vm143_vm0, %v305_v38 }
  0x8e   :  { %870 = vmatmul.mubr.msk.bf16.gmra.mrb[4].mxu0 %vm143_vm0, %v306_v43 }
  0x8f   :  { %873 = vmatprep.mubr.msk.bf16.mxu0 %vm143_vm0, %v307_v44 }
  0x96   :  { %874 = vmatmul.mubr.msk.bf16.gmra.mrb[8].mxu0 %vm143_vm0, %v308_v49  ;;  %v1128_v49 = vmov 0.0  }
  0x97   :  { %877 = vmatprep.mubr.msk.bf16.mxu0 %vm143_vm0, %v309_v50  ;;  %905 = vmatprep.subr.bf16.mxu1 %v1128_v49  ;;  %v674_v50 = vld [vmem:[%s1325_s8] sm:$0x3] }
  0x98   :  { %677 = vperm.xlu0 %970, %v674_v50  }
  0x9e   :  { %878 = vmatmul.mubr.msk.bf16.gmra.mrb[12].mxu0 %vm143_vm0, %v310_v53 }
 0x159   :  { %v867_v57 = vpop.f32.mrb[0].mxu0 }
 0x15a   :  { %v925_v58 = vadd.f32 %v867_v57, %v775_v56  ;;  %v385_v59 = vpop.f32.mrb[1].mxu0 }
 0x15b   :  { %v926_v60 = vadd.f32 %v775_v56, %v385_v59  ;;  %v868_v61 = vpop.f32.mrb[2].mxu0 }
 0x15c   :  { %v927_v62 = vadd.f32 %v868_v61, %v775_v56  ;;  %v388_v63 = vpop.f32.mrb[3].mxu0  ;;  %v466_v1 = vmax.f32 %v925_v58, 0.0 }
 0x15d   :  { %v928_v0 = vadd.f32 %v775_v56, %v388_v63  ;;  %v464_v3 = vmax.f32 %v926_v60, 0.0 }
 0x15e   :  { %v467_v2 = vmax.f32 %v927_v62, 0.0 }
 0x15f   :  { %v465_v4 = vmax.f32 %v928_v0, 0.0 }
 0x160   :  { %v481_v5 = vpack.c.bf16 %v467_v2, %v466_v1 }
 0x161   :  { %v871_v6 = vpop.f32.mrb[4].mxu0  ;;  %v480_v7 = vpack.c.bf16 %v465_v4, %v464_v3 }
 0x162   :  { %v929_v8 = vadd.f32 %v871_v6, %v775_v56  ;;  %v401_v9 = vpop.f32.mrb[5].mxu0 }
 0x163   :  { %v930_v10 = vadd.f32 %v775_v56, %v401_v9  ;;  %v872_v11 = vpop.f32.mrb[6].mxu0  ;;  %889 = vmatprep.mubr.msk.bf16.mxu1 %vm527_vm1, %v480_v7 }
 0x164   :  { %v931_v12 = vadd.f32 %v872_v11, %v775_v56  ;;  %v404_v13 = vpop.f32.mrb[7].mxu0  ;;  %890 = vmatmul.mubr.msk.bf16.vlgmr.msra.gmra.mrb[0].mxu1 %vm527_vm1, %v481_v5  ;;  %v470_v15 = vmax.f32 %v929_v8, 0.0 }
 0x165   :  { %v932_v14 = vadd.f32 %v775_v56, %v404_v13  ;;  %v468_v17 = vmax.f32 %v930_v10, 0.0 }
 0x166   :  { %v471_v16 = vmax.f32 %v931_v12, 0.0 }
 0x167   :  { %v469_v18 = vmax.f32 %v932_v14, 0.0 }
 0x168   :  { %v483_v19 = vpack.c.bf16 %v471_v16, %v470_v15 }
 0x169   :  { %v482_v20 = vpack.c.bf16 %v469_v18, %v468_v17  ;;  %v875_v21 = vpop.f32.mrb[8].mxu0 }
 0x16a   :  { %v933_v22 = vadd.f32 %v875_v21, %v775_v56  ;;  %v417_v23 = vpop.f32.mrb[9].mxu0 }
 0x16b   :  { %v934_v24 = vadd.f32 %v775_v56, %v417_v23  ;;  %v876_v25 = vpop.f32.mrb[10].mxu0  ;;  %893 = vmatprep.mubr.msk.bf16.mxu1 %vm527_vm1, %v482_v20 }
 0x16c   :  { %v935_v26 = vadd.f32 %v876_v25, %v775_v56  ;;  %v420_v27 = vpop.f32.mrb[11].mxu0  ;;  %894 = vmatmul.mubr.msk.bf16.gmra.mrb[4].mxu1 %vm527_vm1, %v483_v19  ;;  %v474_v29 = vmax.f32 %v933_v22, 0.0 }
 0x16d   :  { %v936_v28 = vadd.f32 %v775_v56, %v420_v27  ;;  %v472_v31 = vmax.f32 %v934_v24, 0.0 }
 0x16e   :  { %v475_v30 = vmax.f32 %v935_v26, 0.0 }
 0x16f   :  { %v473_v32 = vmax.f32 %v936_v28, 0.0 }
 0x170   :  { %v485_v33 = vpack.c.bf16 %v475_v30, %v474_v29 }
 0x171   :  { %v484_v34 = vpack.c.bf16 %v473_v32, %v472_v31  ;;  %v879_v35 = vpop.f32.mrb[12].mxu0 }
 0x172   :  { %v937_v36 = vadd.f32 %v879_v35, %v775_v56  ;;  %v433_v37 = vpop.f32.mrb[13].mxu0 }
 0x173   :  { %v938_v38 = vadd.f32 %v775_v56, %v433_v37  ;;  %v880_v39 = vpop.f32.mrb[14].mxu0  ;;  %897 = vmatprep.mubr.msk.bf16.mxu1 %vm527_vm1, %v484_v34 }
 0x174   :  { %v939_v40 = vadd.f32 %v880_v39, %v775_v56  ;;  %v436_v41 = vpop.f32.mrb[15].mxu0  ;;  %898 = vmatmul.mubr.msk.bf16.gmra.mrb[8].mxu1 %vm527_vm1, %v485_v33  ;;  %v478_v43 = vmax.f32 %v937_v36, 0.0 }
 0x175   :  { %v940_v42 = vadd.f32 %v775_v56, %v436_v41  ;;  %v476_v45 = vmax.f32 %v938_v38, 0.0 }
 0x176   :  { %v479_v44 = vmax.f32 %v939_v40, 0.0 }
 0x177   :  { %v477_v46 = vmax.f32 %v940_v42, 0.0 }
 0x178   :  { %v487_v47 = vpack.c.bf16 %v479_v44, %v478_v43 }
 0x179   :  { %v486_v48 = vpack.c.bf16 %v477_v46, %v476_v45 }
 0x17b   :  { %901 = vmatprep.mubr.msk.bf16.mxu1 %vm527_vm1, %v486_v48 }
 0x17c   :  { %902 = vmatmul.mubr.msk.bf16.gmra.mrb[12].mxu1 %vm527_vm1, %v487_v47 }
 0x17d   :  { %921 = vmatprep.mubr.msk.bf16.mxu1 %vm1129_vm2, %v1128_v49 }
 0x237   :  { %v891_v53 = vpop.f32.mrb[0].mxu1 }
 0x238   :  { %v595_v54 = vadd.f32 %v891_v53, %v786_v52  ;;  %v586_v55 = vpop.f32.mrb[1].mxu1 }
 0x239   :  { %v587_v56 = vadd.f32 %v786_v52, %v586_v55  ;;  %v892_v57 = vpop.f32.mrb[2].mxu1  ;;  %v678_v55 = vpop.permute.xlu0 %677 }
 0x23a   :  { %v598_v58 = vadd.f32 %v892_v57, %v786_v52  ;;  %v589_v59 = vpop.f32.mrb[3].mxu1  ;;  %v651_v61 = vmax.f32 %v595_v54, 0.0  ;;  %v673_v54 = vld [vmem:[%s1324_s7] sm:$0x1] }
 0x23b   :  { %v590_v60 = vadd.f32 %v786_v52, %v589_v59  ;;  %v649_v63 = vmax.f32 %v587_v56, 0.0 }
 0x23c   :  { %v652_v62 = vmax.f32 %v598_v58, 0.0 }
 0x23d   :  { %v650_v0 = vmax.f32 %v590_v60, 0.0 }
 0x23e   :  { %v666_v1 = vpack.c.bf16 %v652_v62, %v651_v61 }
 0x23f   :  { %v665_v2 = vpack.c.bf16 %v650_v0, %v649_v63  ;;  %v895_v3 = vpop.f32.mrb[4].mxu1 }
 0x240   :  { %v611_v4 = vadd.f32 %v895_v3, %v786_v52  ;;  %v602_v5 = vpop.f32.mrb[5].mxu1  ;;  %v687_v23 = vsel %vm527_vm1, %v666_v1, 0 }
 0x241   :  { %v603_v6 = vadd.f32 %v786_v52, %v602_v5  ;;  %v896_v7 = vpop.f32.mrb[6].mxu1  ;;  %v684_v8 = vsel %vm527_vm1, %v665_v2, 0 }
 0x242   :  { %v614_v9 = vadd.f32 %v896_v7, %v786_v52  ;;  %v605_v10 = vpop.f32.mrb[7].mxu1  ;;  %906 = vmatpush3.bf16.xpose.msra.mxu1 %v684_v8  ;;  %v655_v12 = vmax.f32 %v611_v4, 0.0 }
 0x243   :  { %v606_v11 = vadd.f32 %v786_v52, %v605_v10  ;;  %907 = vmatprep.subr.bf16.mxu1 %v1128_v49  ;;  %v653_v14 = vmax.f32 %v603_v6, 0.0 }
 0x244   :  { %v656_v13 = vmax.f32 %v614_v9, 0.0 }
 0x245   :  { %v654_v15 = vmax.f32 %v606_v11, 0.0 }
 0x246   :  { %v668_v16 = vpack.c.bf16 %v656_v13, %v655_v12 }
 0x247   :  { %v667_v17 = vpack.c.bf16 %v654_v15, %v653_v14  ;;  %v899_v18 = vpop.f32.mrb[8].mxu1 }
 0x248   :  { %v627_v19 = vadd.f32 %v899_v18, %v786_v52  ;;  %v618_v20 = vpop.f32.mrb[9].mxu1  ;;  %v693_v48 = vsel %vm527_vm1, %v668_v16, 0 }
 0x249   :  { %v619_v21 = vadd.f32 %v786_v52, %v618_v20  ;;  %v900_v22 = vpop.f32.mrb[10].mxu1  ;;  %v690_v38 = vsel %vm527_vm1, %v667_v17, 0 }
 0x24a   :  { %v630_v24 = vadd.f32 %v900_v22, %v786_v52  ;;  %v621_v25 = vpop.f32.mrb[11].mxu1  ;;  %908 = vmatpush3.bf16.xpose.msra.mxu1 %v687_v23  ;;  %v659_v27 = vmax.f32 %v627_v19, 0.0 }
 0x24b   :  { %v622_v26 = vadd.f32 %v786_v52, %v621_v25  ;;  %909 = vmatprep.subr.bf16.mxu1 %v1128_v49  ;;  %v657_v29 = vmax.f32 %v619_v21, 0.0 }
 0x24c   :  { %v660_v28 = vmax.f32 %v630_v24, 0.0 }
 0x24d   :  { %v658_v30 = vmax.f32 %v622_v26, 0.0 }
 0x24e   :  { %v670_v31 = vpack.c.bf16 %v660_v28, %v659_v27 }
 0x24f   :  { %v669_v32 = vpack.c.bf16 %v658_v30, %v657_v29  ;;  %v903_v33 = vpop.f32.mrb[12].mxu1 }
 0x250   :  { %v643_v34 = vadd.f32 %v903_v33, %v786_v52  ;;  %v634_v35 = vpop.f32.mrb[13].mxu1  ;;  %v699_v51 = vsel %vm527_vm1, %v670_v31, 0 }
 0x251   :  { %v635_v36 = vadd.f32 %v786_v52, %v634_v35  ;;  %v904_v37 = vpop.f32.mrb[14].mxu1  ;;  %v696_v50 = vsel %vm527_vm1, %v669_v32, 0 }
 0x252   :  { %v646_v39 = vadd.f32 %v904_v37, %v786_v52  ;;  %v637_v40 = vpop.f32.mrb[15].mxu1  ;;  %910 = vmatpush3.bf16.xpose.msra.mxu1 %v690_v38  ;;  %v663_v42 = vmax.f32 %v643_v34, 0.0 }
 0x253   :  { %v638_v41 = vadd.f32 %v786_v52, %v637_v40  ;;  %911 = vmatprep.subr.bf16.mxu1 %v1128_v49  ;;  %v661_v44 = vmax.f32 %v635_v36, 0.0 }
 0x254   :  { %v664_v43 = vmax.f32 %v646_v39, 0.0 }
 0x255   :  { %v662_v45 = vmax.f32 %v638_v41, 0.0 }
 0x256   :  { %v672_v46 = vpack.c.bf16 %v664_v43, %v663_v42 }
 0x257   :  { %v671_v47 = vpack.c.bf16 %v662_v45, %v661_v44 }
 0x258   :  { %v705_v53 = vsel %vm527_vm1, %v672_v46, 0 }
 0x259   :  { %v702_v52 = vsel %vm527_vm1, %v671_v47, 0 }
 0x25a   :  { %912 = vmatpush3.bf16.xpose.msra.mxu1 %v693_v48 }
 0x25b   :  { %913 = vmatprep.subr.bf16.mxu1 %v1128_v49 }
 0x262   :  { %914 = vmatpush3.bf16.xpose.msra.mxu1 %v696_v50 }
 0x263   :  { %915 = vmatprep.subr.bf16.mxu1 %v1128_v49 }
 0x26a   :  { %916 = vmatpush3.bf16.xpose.msra.mxu1 %v699_v51 }
 0x26b   :  { %917 = vmatprep.subr.bf16.mxu1 %v1128_v49 }
 0x272   :  { %918 = vmatpush3.bf16.xpose.msra.mxu1 %v702_v52 }
 0x273   :  { %919 = vmatprep.subr.bf16.mxu1 %v1128_v49 }
 0x27a   :  { %920 = vmatpush3.bf16.xpose.msra.mxu1 %v705_v53 }
 0x281   :  { %922 = vmatmul.mubr.msk.bf16.vlgmr.msra.gmra.mrb[16].mxu1 %vm527_vm1, %v673_v54 }
 0x354   :  { %v741_v56 = vpop.f32.mrb[16].mxu1 }
 0x355   :  { %v742_v57 = vadd.f32 %v741_v56, %v678_v55  ;;  %v923_v58 = vpop.f32.mrb[17].mxu1 }
 0x356   :  { %v744_v59 = vpop.f32.mrb[18].mxu1 }
 0x357   :  { %747 = vst [vmem:[#allocation11] sm:$0x3] %v742_v57  ;;  %v924_v60 = vpop.f32.mrb[19].mxu1 }
 0x358   :  { %1100 = shalt.err (!%p1097_p2)
}
 0x359   :  { %s1101_s10 = scalar_lea.hbm %s1326_s9, 32 }
 0x35a   :  { %p1102_p3 = scmp.ne.s32.totalorder %s1326_s9, %s1101_s10  ;;  %p1105_p4 = scmp.lt.u32.totalorder %s1101_s10, %s1326_s9 }
 0x35c   :  { %p1107_p5 = pnand %p1105_p4, %p1102_p3 }
 0x35e   :  { %1110 = shalt.err (!%p1107_p5)
}
 0x35f   :  { %757 = dma.vmem_to_hbm [thread:$0]  %s755_s12, 32, %s1326_s9, [#allocation4]  }
 0x360   :  { %1117 = dma.done.wait [#allocation4], 32  }
 0x361   :  { %1118 = vsyncadd [#allocation4], 4294967264 }
 0x362   :  { %761 = vsyncpa [#allocation3], 1 }
 0x363   :  { %762 = vsyncpa [#allocation6], 1 }
 0x364   :  { %763 = vsyncpa [#allocation9], 1 }
 0x365   :  { %764 = vsyncpa [#allocation4], 1 }

</bundles_post_ra>
